<compile_context>
chip_gen: v7x
topology: tpu7x:2x2x1
jax: 0.10.0
libtpu: 0.0.40
codegen_flags: <defaults>
</compile_context>

<pallas_src>
import functools

import jax
import jax.numpy as jnp
from jax.experimental import pallas as pl
from jax.experimental.pallas import tpu as pltpu


def _round_up(x, m):
    return (x + m - 1) // m * m


def _softplus(x):
    # Numerically stable softplus (matches torch.nn.functional.softplus).
    return jnp.maximum(x, 0.0) + jnp.log1p(jnp.exp(-jnp.abs(x)))


def _mu_activation(mu, distribution):
    if distribution in ("zig", "ziln"):
        return _softplus(jnp.maximum(mu, -1.0))
    if distribution == "zinb":
        return jnp.exp(mu)
    if distribution == "zie":
        return _softplus(mu)
    raise ValueError(f"unknown distribution: {distribution}")


def _dl_activation(dl, distribution):
    if distribution == "ziln":
        return jnp.clip(dl, -3.0, 3.0)
    return dl


def _vae_decoder_kernel(z_ref, w3_ref, b3_ref, w45_ref, b45_ref, out_ref, h3_ref,
                        *, n_mu_tiles, distribution):
    j = pl.program_id(1)

    # fc3 + softplus: once per batch tile.  N (j) is the innermost, "arbitrary"
    # grid axis, so j == 0 runs first for each batch tile and the VMEM scratch
    # persists across the remaining N tiles.
    @pl.when(j == 0)
    def _():
        h3 = jnp.dot(z_ref[...].astype(w3_ref.dtype), w3_ref[...],
                     preferred_element_type=jnp.float32) + b3_ref[...]
        h3_ref[...] = _softplus(h3)

    # Fused fc4|fc5: one MXU stream over the concatenated (hidden, 2*N) weight.
    y = jnp.dot(h3_ref[...].astype(w45_ref.dtype), w45_ref[...],
                preferred_element_type=jnp.float32) + b45_ref[...]

    # First n_mu_tiles N-tiles belong to fc4 (mu), the rest to fc5 (dropout logits).
    @pl.when(j < n_mu_tiles)
    def _():
        out_ref[...] = _mu_activation(y, distribution)

    @pl.when(j >= n_mu_tiles)
    def _():
        out_ref[...] = _dl_activation(y, distribution)


def prepare_decoder_params(params, *, weight_dtype=jnp.float32,
                           tn_target=512, tm_target=256):
    """One-time weight prep (hoisted out of the per-call path):
    transpose to (in, out), pad lane dims to 128-multiples, fuse fc4|fc5,
    optionally cast weights to bf16 (bias / epilogue stay f32)."""
    hidden_dim, latent_dim = params["fc3_w"].shape
    input_dim = params["fc4_w"].shape[0]

    lane = 128
    l_pad = _round_up(latent_dim, lane)
    h_pad = _round_up(hidden_dim, lane)
    tn = min(tn_target, _round_up(input_dim, lane))
    n_pad = _round_up(input_dim, tn)

    def pad2(x, r, c):
        return jnp.pad(x, ((0, r - x.shape[0]), (0, c - x.shape[1])))

    w3t = pad2(params["fc3_w"].T.astype(jnp.float32), l_pad, h_pad).astype(weight_dtype)
    b3 = jnp.pad(params["fc3_b"].astype(jnp.float32),
                 (0, h_pad - hidden_dim)).reshape(1, h_pad)

    w4t = pad2(params["fc4_w"].T.astype(jnp.float32), h_pad, n_pad)
    w5t = pad2(params["fc5_w"].T.astype(jnp.float32), h_pad, n_pad)
    w45 = jnp.concatenate([w4t, w5t], axis=1).astype(weight_dtype)  # (h_pad, 2*n_pad)

    b4 = jnp.pad(params["fc4_b"].astype(jnp.float32), (0, n_pad - input_dim))
    b5 = jnp.pad(params["fc5_b"].astype(jnp.float32), (0, n_pad - input_dim))
    b45 = jnp.concatenate([b4, b5]).reshape(1, 2 * n_pad)

    return {
        "w3t": w3t, "b3": b3, "w45": w45, "b45": b45,
        "dims": (input_dim, hidden_dim, latent_dim),   # python ints (static)
        "pads": (l_pad, h_pad, n_pad, tn),             # python ints (static)
        "tm_target": tm_target,
    }


def _vmem_limit_bytes(tm, tn, l_pad, h_pad, weight_bytes):
    # resident fc3 weight/bias + h3 scratch + double-buffered streamed tiles,
    # with 2x headroom; clamped so it stays safe on v7x's 64 MiB physical VMEM.
    resident = l_pad * h_pad * weight_bytes + h_pad * 4 + tm * h_pad * 4
    streamed = 2 * (tm * l_pad * 4 + h_pad * tn * weight_bytes + tn * 4 + tm * tn * 4)
    est = 2 * (resident + streamed)
    return int(min(max(est, 16 * 1024 * 1024), 48 * 1024 * 1024))


def vae_decoder_forward(z, prepared, distribution):
    """Pallas forward of VAE_decoder. Returns (mu_act, dropout_logits)."""
    input_dim, hidden_dim, latent_dim = prepared["dims"]
    l_pad, h_pad, n_pad, tn = prepared["pads"]

    batch = z.shape[0]
    tm = min(prepared["tm_target"], _round_up(batch, 8))
    b_pad = _round_up(batch, tm)

    z_p = jnp.pad(z.astype(jnp.float32),
                  ((0, b_pad - batch), (0, l_pad - latent_dim)))

    n_mu_tiles = n_pad // tn
    grid = (b_pad // tm, 2 * n_pad // tn)
    weight_bytes = jnp.dtype(prepared["w3t"].dtype).itemsize

    kernel = functools.partial(_vae_decoder_kernel,
                               n_mu_tiles=n_mu_tiles,
                               distribution=distribution)

    out = pl.pallas_call(
        kernel,
        out_shape=jax.ShapeDtypeStruct((b_pad, 2 * n_pad), jnp.float32),
        grid_spec=pltpu.PrefetchScalarGridSpec(
            num_scalar_prefetch=0,
            grid=grid,
            in_specs=[
                pl.BlockSpec((tm, l_pad), lambda i, j: (i, 0)),     # z: re-DMA only on new batch tile
                pl.BlockSpec((l_pad, h_pad), lambda i, j: (0, 0)),  # fc3 weight: resident
                pl.BlockSpec((1, h_pad), lambda i, j: (0, 0)),      # fc3 bias:   resident
                pl.BlockSpec((h_pad, tn), lambda i, j: (0, j)),     # fused fc4|fc5 weight: streamed
                pl.BlockSpec((1, tn), lambda i, j: (0, j)),         # fused bias: streamed
            ],
            out_specs=pl.BlockSpec((tm, tn), lambda i, j: (i, j)),
            scratch_shapes=[pltpu.VMEM((tm, h_pad), jnp.float32)],  # cached h3
        ),
        compiler_params=pltpu.CompilerParams(
            # batch tiles are independent (megacore-shardable on v7x);
            # N axis must stay "arbitrary" because h3 is cached at j == 0.
            dimension_semantics=("parallel", "arbitrary"),
            vmem_limit_bytes=_vmem_limit_bytes(tm, tn, l_pad, h_pad, weight_bytes),
        ),
    )(z_p, prepared["w3t"], prepared["b3"], prepared["w45"], prepared["b45"])

    mu = out[:batch, :input_dim]
    dl = out[:batch, n_pad:n_pad + input_dim]
    return mu, dl


# ----------------------------- test harness -----------------------------

def _init_params(key, input_dim, hidden_dim, latent_dim):
    ks = jax.random.split(key, 6)
    scale = 0.1
    return {
        "fc3_w": scale * jax.random.normal(ks[0], (hidden_dim, latent_dim), jnp.float32),
        "fc3_b": scale * jax.random.normal(ks[1], (hidden_dim,), jnp.float32),
        "fc4_w": scale * jax.random.normal(ks[2], (input_dim, hidden_dim), jnp.float32),
        "fc4_b": scale * jax.random.normal(ks[3], (input_dim,), jnp.float32),
        "fc5_w": scale * jax.random.normal(ks[4], (input_dim, hidden_dim), jnp.float32),
        "fc5_b": scale * jax.random.normal(ks[5], (input_dim,), jnp.float32),
    }


def _reference(z, params, distribution):
    h3 = _softplus(z @ params["fc3_w"].T + params["fc3_b"])
    mu = h3 @ params["fc4_w"].T + params["fc4_b"]
    dl = h3 @ params["fc5_w"].T + params["fc5_b"]
    return _mu_activation(mu, distribution), _dl_activation(dl, distribution)


def _check(z, params, prepared, distribution, atol, rtol):
    mu, dl = vae_decoder_forward(z, prepared, distribution)
    jax.block_until_ready((mu, dl))
    mu_ref, dl_ref = _reference(z, params, distribution)
    ok = bool(jnp.allclose(mu, mu_ref, atol=atol, rtol=rtol)
              and jnp.allclose(dl, dl_ref, atol=atol, rtol=rtol))
    if not ok:
        print(f"MISMATCH dist={distribution} "
              f"mu_err={float(jnp.max(jnp.abs(mu - mu_ref)))} "
              f"dl_err={float(jnp.max(jnp.abs(dl - dl_ref)))}")
    return ok


if __name__ == "__main__":
    key = jax.random.PRNGKey(0)
    ok = True

    # Case 1: module-sized toy shapes (batch=8, latent=32, hidden=64, input=128),
    # 'ziln' exercises both the mu clamp+softplus and the dropout-logit clamp.
    kz1, kp1, kz2, kp2 = jax.random.split(key, 4)
    z1 = jax.random.normal(kz1, (8, 32), jnp.float32)
    p1 = _init_params(kp1, 128, 64, 32)
    prep1 = prepare_decoder_params(p1, weight_dtype=jnp.float32)
    ok &= _check(z1, p1, prep1, "ziln", atol=1e-4, rtol=1e-4)

    # Case 2: unaligned dims exercising padding + multi-tile N grid (exp path).
    z2 = jax.random.normal(kz2, (24, 20), jnp.float32)
    p2 = _init_params(kp2, 200, 96, 20)
    prep2 = prepare_decoder_params(p2, weight_dtype=jnp.float32)
    ok &= _check(z2, p2, prep2, "zinb", atol=1e-4, rtol=1e-4)

    if not ok:
        raise SystemExit(1)
    print("KERNEL_OK")
</pallas_src>

<mosaic_0001>
module attributes {stable_mosaic.version = 11 : i64} {
  func.func @_vae_decoder_kernel(%arg0: i32, %arg1: i32, %arg2: memref<8x128xf32, #tpu.memory_space<vmem>>, %arg3: memref<128x128xf32, #tpu.memory_space<vmem>>, %arg4: memref<1x128xf32, #tpu.memory_space<vmem>>, %arg5: memref<128x128xf32, #tpu.memory_space<vmem>>, %arg6: memref<1x128xf32, #tpu.memory_space<vmem>>, %arg7: memref<8x128xf32, #tpu.memory_space<vmem>>, %arg8: memref<8x128xf32, #tpu.memory_space<vmem>>) attributes {dimension_semantics = [#tpu.dimension_semantics<parallel>, #tpu.dimension_semantics<arbitrary>], iteration_bounds = array<i64: 1, 2>, scalar_prefetch = 0 : i64, scratch_operands = 1 : i64, tpu.core_type = #tpu.core_type<tc>, window_params = [{transform_indices = @transform_0, window_bounds = array<i64: 8, 128>}, {pipeline_mode = #tpu.pipeline_mode<synchronous>, transform_indices = @transform_1, window_bounds = array<i64: 128, 128>}, {pipeline_mode = #tpu.pipeline_mode<synchronous>, transform_indices = @transform_2, window_bounds = array<i64: 1, 128>}, {transform_indices = @transform_3, window_bounds = array<i64: 128, 128>}, {transform_indices = @transform_4, window_bounds = array<i64: 1, 128>}, {transform_indices = @transform_5, window_bounds = array<i64: 8, 128>}]} {
    %c0_i32 = arith.constant 0 : i32
    %0 = arith.cmpi eq, %arg1, %c0_i32 : i32
    %1 = arith.extui %0 : i1 to i32
    %c0_i32_0 = arith.constant 0 : i32
    %2 = arith.cmpi ne, %1, %c0_i32_0 : i32
    scf.if %2 {
      %c0_9 = arith.constant 0 : index
      %c0_10 = arith.constant 0 : index
      %15 = vector.load %arg2[%c0_9, %c0_10] : memref<8x128xf32, #tpu.memory_space<vmem>>, vector<8x128xf32>
      %c0_11 = arith.constant 0 : index
      %c0_12 = arith.constant 0 : index
      %16 = vector.load %arg3[%c0_11, %c0_12] : memref<128x128xf32, #tpu.memory_space<vmem>>, vector<128x128xf32>
      %cst_13 = arith.constant dense<0.000000e+00> : vector<8x128xf32>
      %17 = tpu.matmul %15, %16, %cst_13 {dimension_numbers = #tpu.dot_dimension_numbers<[1], [0], [0], [1], [0, 0, 1, 1], [], []>} : vector<8x128xf32>, vector<128x128xf32>, vector<8x128xf32> -> vector<8x128xf32>
      %c0_14 = arith.constant 0 : index
      %c0_15 = arith.constant 0 : index
      %18 = vector.load %arg4[%c0_14, %c0_15] : memref<1x128xf32, #tpu.memory_space<vmem>>, vector<1x128xf32>
      %19 = vector.broadcast %18 : vector<1x128xf32> to vector<8x128xf32>
      %20 = arith.addf %17, %19 : vector<8x128xf32>
      %cst_16 = arith.constant 0.000000e+00 : f32
      %21 = vector.broadcast %cst_16 : f32 to vector<8x128xf32>
      %22 = arith.maximumf %20, %21 : vector<8x128xf32>
      %23 = math.absf %20 : vector<8x128xf32>
      %cst_17 = arith.constant 0.000000e+00 : f32
      %24 = vector.broadcast %cst_17 : f32 to vector<8x128xf32>
      %25 = arith.subf %24, %23 : vector<8x128xf32>
      %26 = math.exp %25 : vector<8x128xf32>
      %27 = math.log1p %26 : vector<8x128xf32>
      %28 = arith.addf %22, %27 : vector<8x128xf32>
      %c0_18 = arith.constant 0 : index
      %c0_19 = arith.constant 0 : index
      %29 = vector.load %arg8[%c0_18, %c0_19] : memref<8x128xf32, #tpu.memory_space<vmem>>, vector<8x128xf32>
      tpu.vector_store %arg8[%c0_18, %c0_19], %28 {strides = array<i32>} : memref<8x128xf32, #tpu.memory_space<vmem>>, vector<8x128xf32>,
    } else {
    }
    %c0 = arith.constant 0 : index
    %c0_1 = arith.constant 0 : index
    %3 = vector.load %arg8[%c0, %c0_1] : memref<8x128xf32, #tpu.memory_space<vmem>>, vector<8x128xf32>
    %c0_2 = arith.constant 0 : index
    %c0_3 = arith.constant 0 : index
    %4 = vector.load %arg5[%c0_2, %c0_3] : memref<128x128xf32, #tpu.memory_space<vmem>>, vector<128x128xf32>
    %cst = arith.constant dense<0.000000e+00> : vector<8x128xf32>
    %5 = tpu.matmul %3, %4, %cst {dimension_numbers = #tpu.dot_dimension_numbers<[1], [0], [0], [1], [0, 0, 1, 1], [], []>} : vector<8x128xf32>, vector<128x128xf32>, vector<8x128xf32> -> vector<8x128xf32>
    %c0_4 = arith.constant 0 : index
    %c0_5 = arith.constant 0 : index
    %6 = vector.load %arg6[%c0_4, %c0_5] : memref<1x128xf32, #tpu.memory_space<vmem>>, vector<1x128xf32>
    %7 = vector.broadcast %6 : vector<1x128xf32> to vector<8x128xf32>
    %8 = arith.addf %5, %7 : vector<8x128xf32>
    %c1_i32 = arith.constant 1 : i32
    %9 = arith.cmpi slt, %arg1, %c1_i32 : i32
    %10 = arith.extui %9 : i1 to i32
    %c0_i32_6 = arith.constant 0 : i32
    %11 = arith.cmpi ne, %10, %c0_i32_6 : i32
    scf.if %11 {
      %cst_9 = arith.constant -1.000000e+00 : f32
      %15 = vector.broadcast %cst_9 : f32 to vector<8x128xf32>
      %16 = arith.maximumf %8, %15 : vector<8x128xf32>
      %cst_10 = arith.constant 0.000000e+00 : f32
      %17 = vector.broadcast %cst_10 : f32 to vector<8x128xf32>
      %18 = arith.maximumf %16, %17 : vector<8x128xf32>
      %19 = math.absf %16 : vector<8x128xf32>
      %cst_11 = arith.constant 0.000000e+00 : f32
      %20 = vector.broadcast %cst_11 : f32 to vector<8x128xf32>
      %21 = arith.subf %20, %19 : vector<8x128xf32>
      %22 = math.exp %21 : vector<8x128xf32>
      %23 = math.log1p %22 : vector<8x128xf32>
      %24 = arith.addf %18, %23 : vector<8x128xf32>
      %c0_12 = arith.constant 0 : index
      %c0_13 = arith.constant 0 : index
      %25 = vector.load %arg7[%c0_12, %c0_13] : memref<8x128xf32, #tpu.memory_space<vmem>>, vector<8x128xf32>
      tpu.vector_store %arg7[%c0_12, %c0_13], %24 {strides = array<i32>} : memref<8x128xf32, #tpu.memory_space<vmem>>, vector<8x128xf32>,
    } else {
    }
    %c1_i32_7 = arith.constant 1 : i32
    %12 = arith.cmpi sge, %arg1, %c1_i32_7 : i32
    %13 = arith.extui %12 : i1 to i32
    %c0_i32_8 = arith.constant 0 : i32
    %14 = arith.cmpi ne, %13, %c0_i32_8 : i32
    scf.if %14 {
      %cst_9 = arith.constant -3.000000e+00 : f32
      %cst_10 = arith.constant 3.000000e+00 : f32
      %15 = vector.broadcast %cst_9 : f32 to vector<8x128xf32>
      %16 = arith.maximumf %15, %8 : vector<8x128xf32>
      %17 = vector.broadcast %cst_10 : f32 to vector<8x128xf32>
      %18 = arith.minimumf %17, %16 : vector<8x128xf32>
      %c0_11 = arith.constant 0 : index
      %c0_12 = arith.constant 0 : index
      %19 = vector.load %arg7[%c0_11, %c0_12] : memref<8x128xf32, #tpu.memory_space<vmem>>, vector<8x128xf32>
      tpu.vector_store %arg7[%c0_11, %c0_12], %18 {strides = array<i32>} : memref<8x128xf32, #tpu.memory_space<vmem>>, vector<8x128xf32>,
    } else {
    }
    return
  }
  func.func @transform_0(%arg0: i32, %arg1: i32) -> (i32, i32) {
    %c0_i32 = arith.constant 0 : i32
    %c0_i32_0 = arith.constant 0 : i32
    return %arg0, %c0_i32 : i32, i32
  }
  func.func @transform_1(%arg0: i32, %arg1: i32) -> (i32, i32) {
    %c0_i32 = arith.constant 0 : i32
    %c0_i32_0 = arith.constant 0 : i32
    %c0_i32_1 = arith.constant 0 : i32
    return %c0_i32, %c0_i32_0 : i32, i32
  }
  func.func @transform_2(%arg0: i32, %arg1: i32) -> (i32, i32) {
    %c0_i32 = arith.constant 0 : i32
    %c0_i32_0 = arith.constant 0 : i32
    %c0_i32_1 = arith.constant 0 : i32
    return %c0_i32, %c0_i32_0 : i32, i32
  }
  func.func @transform_3(%arg0: i32, %arg1: i32) -> (i32, i32) {
    %c0_i32 = arith.constant 0 : i32
    %c0_i32_0 = arith.constant 0 : i32
    return %c0_i32, %arg1 : i32, i32
  }
  func.func @transform_4(%arg0: i32, %arg1: i32) -> (i32, i32) {
    %c0_i32 = arith.constant 0 : i32
    %c0_i32_0 = arith.constant 0 : i32
    return %c0_i32, %arg1 : i32, i32
  }
  func.func @transform_5(%arg0: i32, %arg1: i32) -> (i32, i32) {
    %c0_i32 = arith.constant 0 : i32
    return %arg0, %arg1 : i32, i32
  }
}

</mosaic_0001>

<bundles_post_ra>
// kernel: tpu_custom_call.1
= control target key start
LH: loop header
LB: loop body
LE: loop exit
PB: predicated region body
PF: predicated region fallthrough
CT: control target
= control target key end

     0   :  { %10 = vsyncpa [#allocation4], 0  ;;  %s1462_s0 = inlined_call_operand.hbm [shape: f32[8,128], index: 0, kind: input, shape index: {}]   ;;  %s1463_s1 = inlined_call_operand.hbm [shape: f32[128,128], index: 1, kind: input, shape index: {}]   ;;  %s1464_s2 = inlined_call_operand.vmem [shape: f32[1,128], index: 2, kind: input, shape index: {}]   ;;  %s1465_s3 = inlined_call_operand.hbm [shape: f32[128,256], index: 3, kind: input, shape index: {}]   ;;  %s1466_s4 = inlined_call_operand.vmem [shape: f32[1,256], index: 4, kind: input, shape index: {}]   ;;  %s1467_s5 = inlined_call_operand.hbm [shape: f32[8,256], index: 5, kind: output, shape index: {}]  }
   0x1   :  { %11 = vsyncpa [#allocation7], 0 }
   0x2   :  { %12 = vsyncpa [#allocation5], 0 }
   0x3   :  { %14 = vsyncpa [#allocation5 + $0x1], 0  ;;  %s1160_s18 = smov 0   ;;  %s1162_s19 = smov 0  }
   0x4   :  { %s1164_s20 = smov 0   ;;  %s1166_s21 = smov 0  }
   0x5   :  { %s1168_s22 = smov 0   ;;  %s1170_s23 = smov 0  }
   0x6 LB: > { %s1191_s24 = sadd.s32 4294967295, %s1115_s23   ;;  %s665_s25 = sadd.s32 4294967294, %s1115_s23   ;;  %s1115_s23 = sphi %s1170_s23, %s20_s23   ;;  %s1111_s22 = sphi %s1168_s22, %s1500_s22   ;;  %s1107_s21 = sphi %s1166_s21, %s1499_s21   ;;  %s1103_s20 = sphi %s1164_s20, %s1498_s20   ;;  %s1099_s19 = sphi %s1162_s19, %s1497_s19   ;;  %s1095_s18 = sphi %s1160_s18, %s1496_s18  }
   0x7   : > { %p114_p0 = scmp.ne.s32.totalorder %s1103_s20, %s1099_s19  ;;  %p115_p1 = scmp.eq.s32.totalorder %s1115_s23, 0 }
   0x8   : > { %p120_p2 = scmp.ne.s32.totalorder %s1099_s19, %s1095_s18  ;;  %p1468_p3 = scmp.eq.s32.totalorder %s1191_s24, 0 }
   0x9   : > { %p172_p4 = scmp.eq.s32.totalorder %s1191_s24, 1  ;;  %p1202_p5 = por %p115_p1, %p114_p0 }
   0xa   : > { %p178_p6 = scmp.eq.s32.totalorder %s665_s25, 1  ;;  %p1208_p7 = por %p1468_p3, %p120_p2 }
   0xb   : > { %p1212_p8 = por %p172_p4, %p114_p0  ;;  %p666_p10 = scmp.ge.s32.totalorder %s1115_s23, 1 }
   0xc   : > { %s1476_s28 = scalar_select %p1208_p7, 1, 0 }
   0xd   : > { %s1477_s29 = scalar_select %p1212_p8, 1, 0 }
   0xe   : > { %p1216_p9 = por %p178_p6, %p120_p2  ;;  %p185_p11 = scmp.lt.s32.totalorder %s1115_s23, 3 }
   0xf   : > { %s1117_s7 = smov [#allocation3]   ;;  %p868_p1 = scmp.lt.s32.totalorder %s1115_s23, 2 }
  0x10   : > { %s1478_s30 = scalar_select %p1216_p9, 1, 0 }
  0x11   : > { %p1223_p13 = pnand %p666_p10, %p185_p11  ;;  %s200_s8 = sshll.u32 %s1117_s7, 4  ;;  %s201_s8 = int_to_ptr.vmem [resolvable:$true] %s200_s8 }
  0x12   : > { %p1232_p4 = pnand %p868_p1, %p1202_p5  ;;  %s1118_s10 = smov [#allocation6]  }
  0x13   : > { %s1479_s6 = scalar_select %p1223_p13, 1, 0 }
  0x14   : > { %p851_p0 = pneg %p1223_p13  ;;  %s210_s11 = sshll.u32 %s1118_s10, 4  ;;  %s1242_s11 = int_to_ptr.vmem [resolvable:$true] %s210_s11 }
  0x15   : > { %s1480_s9 = scalar_select %p1232_p4, 1, 0 }
  0x16   : > { %p1238_p2 = pnand %p851_p0, %p1468_p3  ;;  %s939_s15 = scalar_lea.hbm %s1462_s0, 128 }
  0x17   : > { %p940_p5 = scmp.ne.s32.totalorder %s1462_s0, %s939_s15  ;;  %p946_p1 = scmp.lt.u32.totalorder %s939_s15, %s1462_s0 }
  0x18   : > { %p941_p6 = pneg %p1238_p2 }
  0x1a   : > { %p942_p10 = pnand %p941_p6, %p940_p5 }
  0x1c   : > { %p943_p11 = pneg %p942_p10 }
  0x1e   : > { %p948_p0 = pnand %p946_p1, %p943_p11 }
  0x20   : > { %951 = shalt.err (!%p948_p0)
}
  0x21   : > { %s952_s7 = scalar_lea.vmem %s201_s8, 128  ;;  %p960_p8 = scmp.lt.s32.totalorder %s201_s8, %s201_s8 }
  0x22   : > { %p953_p12 = scmp.ne.s32.totalorder %s201_s8, %s952_s7  ;;  %p961_p7 = scmp.lt.s32.totalorder %s952_s7, %s952_s7 }
  0x24   : > { %p955_p3 = pnand %p953_p12, %p941_p6  ;;  %p962_p13 = por %p961_p7, %p960_p8 }
  0x26   : > { %p956_p9 = pneg %p955_p3 }
  0x28   : > { %p963_p4 = pnand %p962_p13, %p956_p9 }
  0x2a   : > { %966 = shalt.err (!%p963_p4)
}
  0x2b   : > { %854 = dma.hbm_to_vmem [thread:$0]  (!%p1238_p2), %s1462_s0, 128, %s201_s8, [#allocation4]  }
  0x2c   : > { %s967_s16 = scalar_lea.hbm %s1463_s1, 2048 }
  0x2d   : > { %p968_p3 = scmp.ne.s32.totalorder %s1463_s1, %s967_s16  ;;  %p974_p9 = scmp.lt.u32.totalorder %s967_s16, %s1463_s1 }
  0x2f   : > { %p970_p7 = pnand %p968_p3, %p941_p6 }
  0x31   : > { %p971_p8 = pneg %p970_p7 }
  0x33   : > { %p976_p12 = pnand %p974_p9, %p971_p8 }
  0x35   : > { %979 = shalt.err (!%p976_p12)
}
  0x36   : > { %s980_s8 = scalar_lea.vmem %s1242_s11, 2048  ;;  %p988_p10 = scmp.lt.s32.totalorder %s1242_s11, %s1242_s11 }
  0x37   : > { %p981_p13 = scmp.ne.s32.totalorder %s1242_s11, %s980_s8  ;;  %p989_p11 = scmp.lt.s32.totalorder %s980_s8, %s980_s8 }
  0x39   : > { %p983_p4 = pnand %p981_p13, %p941_p6  ;;  %p990_p1 = por %p989_p11, %p988_p10 }
  0x3b   : > { %p984_p5 = pneg %p983_p4 }
  0x3d   : > { %p991_p0 = pnand %p990_p1, %p984_p5 }
  0x3f   : > { %994 = shalt.err (!%p991_p0)
}
  0x40   : > { %s1473_s10 = smov 128   ;;  %s1474_s13 = smov 8  }
  0x41   : > { %857 = dma.hbm_to_vmem [thread:$0]  (!%p1238_p2), %s1463_s1, 2048, %s1242_s11, [#allocation7], %s1473_s10, %s1473_s10, %s1474_s13  }
  0x42   : > { %s227_s16 = sand.u32 1, %s1115_s23   ;;  %s29_s17 = sadd.s32 1, %s1111_s22 }
  0x43   : > { %s229_s25 = sand.u32 1, %s1103_s20   ;;  %p30_p6 = scmp.ge.s32.totalorder %s29_s17, 2 }
  0x44   : > { %s670_s27 = sshll.u32 %s229_s25, 7  ;;  %s671_s7 = sshll.u32 %s1111_s22, 7 }
  0x45   : > { %s1502_s17 = smov (%p30_p6, %s29_s17), 0  ;;  %s1303_s12 = scalar_lea.hbm %s1465_s3, %s671_s7 }
  0x46   : > { %s231_s11 = scalar_lea.vmem [#allocation8], %s670_s27  ;;  %s104_s15 = ssub.s32 %s1111_s22, %s1502_s17 }
  0x47   : > { %s237_s14 = sshll.u32 %s231_s11, 4  ;;  %p1309_p2 = scmp.eq.s32.totalorder %s104_s15, 0  ;;  %s1307_s14 = int_to_ptr.vmem [resolvable:$true] %s237_s14 }
  0x48   : > { %s1313_s10 = scalar_lea.sflag [#allocation4], %s227_s16  ;;  %s995_s13 = scalar_lea.hbm %s1303_s12, 2048 }
  0x49   : > { %p996_p3 = scmp.ne.s32.totalorder %s1303_s12, %s995_s13  ;;  %p1483_p7 = scmp.ne.s32.totalorder %s1480_s9, 0 }
  0x4a   : > { %s1000_s7 = scalar_lea.hbm %s1465_s3, 4096  ;;  %p1001_p13 = scmp.lt.u32.totalorder %s1303_s12, %s1465_s3 }
  0x4b   : > { %p997_p8 = pneg %p1483_p7  ;;  %p1002_p4 = scmp.lt.u32.totalorder %s1000_s7, %s995_s13 }
  0x4c   : > { %p1004_p10 = scmp.lt.u32.totalorder %s995_s13, %s1303_s12 }
  0x4d   : > { %p998_p9 = pnand %p997_p8, %p996_p3  ;;  %p1003_p5 = por %p1002_p4, %p1001_p13 }
  0x4f   : > { %p999_p12 = pneg %p998_p9  ;;  %p1005_p11 = por %p1004_p10, %p1003_p5 }
  0x51   : > { %p1006_p1 = pnand %p1005_p11, %p999_p12 }
  0x53   : > { %1009 = shalt.err (!%p1006_p1)
}
  0x54   : > { %s1010_s16 = scalar_lea.vmem %s1307_s14, 2048  ;;  %s1121_s15 = smov [#allocation8]  }
  0x55   : > { %p1011_p0 = scmp.ne.s32.totalorder %s1307_s14, %s1010_s16  ;;  %s1015_s26 = sshll.u32 %s1121_s15, 4  ;;  %s1016_s26 = int_to_ptr.vmem [resolvable:$false] %s1015_s26 }
  0x56   : > { %s1017_s27 = scalar_lea.vmem %s1016_s26, 4096  ;;  %p1018_p9 = scmp.lt.s32.totalorder %s1307_s14, %s1016_s26 }
  0x57   : > { %p1013_p6 = pnand %p1011_p0, %p997_p8  ;;  %p1019_p13 = scmp.lt.s32.totalorder %s1017_s27, %s1010_s16 }
  0x59   : > { %p1014_p3 = pneg %p1013_p6  ;;  %p1020_p4 = por %p1019_p13, %p1018_p9 }
  0x5b   : > { %p1021_p5 = pnand %p1020_p4, %p1014_p3 }
  0x5d   : > { %1024 = shalt.err (!%p1021_p5)
}
  0x5e   : > { %s1122_s13 = smov 256   ;;  %s1484_s7 = smov 8  }
  0x5f   : > { %s1485_s8 = smov 128   ;;  %s1486_s11 = sadd.s32 1, %s1103_s20 }
  0x60   : > { %861 = dma.hbm_to_vmem [thread:$0]  (!%p1483_p7), %s1303_s12, 2048, %s1307_s14, %s1313_s10, %s1122_s13, %s1485_s8, %s1484_s7  }
  0x61   : > { %s1348_s15 = scalar_select %p1309_p2, %s1103_s20, %s1486_s11  }
  0x62   : > { %p1487_p8 = scmp.ne.s32.totalorder %s1479_s6, 0 }
  0x63   : > { %p1488_p12 = scmp.eq.s32.totalorder (!%p1487_p8), %s1191_s24, 0 }
  0x64   : > { %255 = sbr.rel (%p1487_p8) target bundleno = 722 (0x2d2), region = 40 }
  0x6b   : > { %1078 = dma.done.wait (%p1488_p12), [#allocation4], 128   ;;  %p1489_p10 = pmov %p1488_p12 }
  0x6d   : > { %1080 = vsyncadd (%p1489_p10), [#allocation4], 4294967168  ;;  %p1490_p11 = pmov %p1489_p10 }
  0x6e   : > { %p1491_p1 = pmov %p1489_p10 }
  0x6f   : > { %1082 = dma.done.wait (%p1490_p11), [#allocation7], 2048  }
  0x70   : > { %1084 = vsyncadd (%p1491_p1), [#allocation7], 4294965248  ;;  %s265_s9 = sand.u32 1, %s1191_s24   ;;  %s1362_s10 = sand.u32 1, %s1099_s19  }
  0x71   : > { %s675_s6 = sshll.u32 %s1362_s10, 7  ;;  %s266_s12 = scalar_lea.sflag [#allocation4], %s265_s9 }
  0x72   : > { %s1365_s14 = scalar_lea.vmem [#allocation8], %s675_s6  ;;  %p1492_p2 = scmp.ne.s32.totalorder %s1476_s28, 0 }
  0x74   : > { %1086 = dma.done.wait (%p1492_p2), %s266_s12, 2048  }
  0x75   : > { %1088 = vsyncadd (%p1492_p2), %s266_s12, 4294965248  ;;  %s676_s25 = sshll.u32 %s1362_s10, 3  ;;  %p299_p7 = scmp.lt.s32.totalorder %s1107_s21, 1 }
  0x76   : > { %s1382_s13 = scalar_lea.vmem [#allocation9], %s676_s25  ;;  %p677_p0 = scmp.ne.s32.totalorder %s1107_s21, 0 }
  0x77   : > { %s1376_s24 = scalar_select %p299_p7, %s1107_s21, 1 }
  0x78   : > { %305 = sbr.rel (%p677_p0) target bundleno = 404 (0x194), region = 56  ;;  %v307_v0 = vld [vmem:[#allocation6] sm:$0xff] (!%p677_p0)  ;;  %v308_v1 = vld [vmem:[#allocation6 + $0x8] sm:$0xff] (!%p677_p0)  ;;  %v309_v2 = vld [vmem:[#allocation6 + $0x10] sm:$0xff] (!%p677_p0)  ;;  %v1123_v3 = vmov (!%p677_p0), 0.0|0.0   ;;  %vm1124_vm0 = vmmov (!%p677_p0), 0  }
  0x79   : > { %s301_s27 = scalar_lea.vmem %s1466_s4, %s1376_s24  ;;  %791 = vmatprep.subr.bf16.mxu0 (!%p677_p0), %v1123_v3  ;;  %v792_v4 = vpack.c.bf16 (!%p677_p0), %v308_v1, %v307_v0  ;;  %v310_v5 = vld [vmem:[#allocation6 + $0x18] sm:$0xff] (!%p677_p0)  ;;  %v1125_v6 = vmov (!%p677_p0), 0.0   ;;  %v311_v8 = vld [vmem:[#allocation6 + $0x20] sm:$0xff] (!%p677_p0)  ;;  %v312_v9 = vld [vmem:[#allocation6 + $0x28] sm:$0xff] (!%p677_p0) }
  0x7a   : > { %753 = vmatprep.mubr.msk.f32.mxu0 (!%p677_p0), %vm1124_vm0, %v1125_v6  ;;  %v795_v7 = vpack.c.bf16 (!%p677_p0), %v310_v5, %v309_v2  ;;  %v798_v10 = vpack.c.bf16 (!%p677_p0), %v312_v9, %v311_v8  ;;  %v313_v11 = vld [vmem:[#allocation6 + $0x30] sm:$0xff] (!%p677_p0)  ;;  %v314_v12 = vld [vmem:[#allocation6 + $0x38] sm:$0xff] (!%p677_p0)  ;;  %v315_v14 = vld [vmem:[#allocation6 + $0x40] sm:$0xff] (!%p677_p0) }
  0x7b   : > { %793 = vmatpush3.bf16.msra.mxu0 (!%p677_p0), %v792_v4  ;;  %v801_v13 = vpack.c.bf16 (!%p677_p0), %v314_v12, %v313_v11  ;;  %v316_v15 = vld [vmem:[#allocation6 + $0x48] sm:$0xff] (!%p677_p0)  ;;  %v317_v17 = vld [vmem:[#allocation6 + $0x50] sm:$0xff] (!%p677_p0)  ;;  %v318_v18 = vld [vmem:[#allocation6 + $0x58] sm:$0xff] (!%p677_p0) }
  0x7c   : > { %794 = vmatprep.subr.bf16.mxu0 (!%p677_p0), %v1123_v3  ;;  %v804_v16 = vpack.c.bf16 (!%p677_p0), %v316_v15, %v315_v14  ;;  %v807_v19 = vpack.c.bf16 (!%p677_p0), %v318_v18, %v317_v17  ;;  %v319_v20 = vld [vmem:[#allocation6 + $0x60] sm:$0xff] (!%p677_p0)  ;;  %v320_v21 = vld [vmem:[#allocation6 + $0x68] sm:$0xff] (!%p677_p0)  ;;  %v321_v23 = vld [vmem:[#allocation6 + $0x70] sm:$0xff] (!%p677_p0) }
  0x7d   : > { %v810_v22 = vpack.c.bf16 (!%p677_p0), %v320_v21, %v319_v20  ;;  %v322_v24 = vld [vmem:[#allocation6 + $0x78] sm:$0xff] (!%p677_p0)  ;;  %v678_v27 = vld [vmem:[%s1464_s2] ss:$0 sm:$0xff] (!%p677_p0) }
  0x7e   : > { %v813_v25 = vpack.c.bf16 (!%p677_p0), %v322_v24, %v321_v23  ;;  %v306_v26 = vld [vmem:[#allocation3] sm:$0xff] (!%p677_p0) }
  0x7f   : > { %796 = vmatpush3.bf16.msra.mxu0 %v795_v7 }
  0x80   : > { %797 = vmatprep.subr.bf16.mxu0 %v1123_v3 }
  0x83   : > { %799 = vmatpush3.bf16.msra.mxu0 %v798_v10 }
  0x84   : > { %800 = vmatprep.subr.bf16.mxu0 %v1123_v3 }
  0x87   : > { %802 = vmatpush3.bf16.msra.mxu0 %v801_v13 }
  0x88   : > { %803 = vmatprep.subr.bf16.mxu0 %v1123_v3 }
  0x8b   : > { %805 = vmatpush3.bf16.msra.mxu0 %v804_v16 }
  0x8c   : > { %806 = vmatprep.subr.bf16.mxu0 %v1123_v3 }
  0x8f   : > { %808 = vmatpush3.bf16.msra.mxu0 %v807_v19 }
  0x90   : > { %809 = vmatprep.subr.bf16.mxu0 %v1123_v3 }
  0x93   : > { %811 = vmatpush3.bf16.msra.mxu0 %v810_v22 }
  0x94   : > { %812 = vmatprep.subr.bf16.mxu0 %v1123_v3 }
  0x97   : > { %814 = vmatpush3.bf16.msra.mxu0 %v813_v25 }
  0x9a   : > { %754 = vmatmul.mubr.f32.vlgmr.msra.gmra.mrb[0].mxu0 %v306_v26 }
 0x16d   : > { %v396_v28 = vpop.f32.mrb[0].mxu0 }
 0x16e   : > { %v397_v29 = vadd.f32 %v678_v27, %v396_v28  ;;  %v755_v30 = vpop.f32.mrb[1].mxu0 }
 0x170   : > { %v401_v31 = vand.u32 2147483647, %v397_v29  ;;  %v400_v42 = vmax.f32 %v397_v29, 0.0 }
 0x172   : > { %v402_v32 = vsub.f32 0.0, %v401_v31 }
 0x174   : > { %v403_v33 = vmul.f32 1.442695, %v402_v32 }
 0x176   : > { %931 = vpow2.f32 %v403_v33 }
 0x180   : > { %v932_v34 = vpop.eup %931 }
 0x181   : > { %v405_v35 = vadd.f32 1.0, %v932_v34  ;;  %v408_v36 = vmul.f32 -0.5, %v932_v34  ;;  %v411_v38 = vand.u32 2147483647, %v932_v34 }
 0x183   : > { %933 = vlog2.f32 %v405_v35  ;;  %v409_v37 = vadd.f32 1.0, %v408_v36  ;;  %vm412_vm1 = vcmp.lt.f32.partialorder %v411_v38, 0.0004427343 }
 0x185   : > { %v410_v41 = vmul.f32 %v932_v34, %v409_v37 }
 0x18d   : > { %v934_v39 = vpop.eup %933 }
 0x18e   : > { %v407_v40 = vmul.f32 0.6931472, %v934_v39 }
 0x190   : > { %v413_v43 = vsel %vm412_vm1, %v410_v41, %v407_v40 }
 0x191   : > { %v414_v44 = vadd.f32 %v413_v43, %v400_v42 }
 0x193   : > { %415 = vst [vmem:[#allocation2] sm:$0xff] %v414_v44 }
 0x194 PF: > { %v417_v45 = vld [vmem:[%s1365_s14] sm:$0xff]  ;;  %v418_v46 = vld [vmem:[%s1365_s14 + $0x8] sm:$0xff]  ;;  %v419_v47 = vld [vmem:[%s1365_s14 + $0x10] sm:$0xff]  ;;  %v1126_v48 = vmov 0.0|0.0   ;;  %vm1127_vm2 = vmmov 0   ;;  %v1128_v51 = vmov 0.0  }
 0x195   : > { %815 = vmatprep.subr.bf16.mxu0 %v1126_v48  ;;  %v816_v49 = vpack.c.bf16 %v418_v46, %v417_v45  ;;  %v420_v50 = vld [vmem:[%s1365_s14 + $0x18] sm:$0xff]  ;;  %788 = vmatprep.mubr.msk.f32.mxu0 %vm1127_vm2, %v1128_v51  ;;  %v421_v53 = vld [vmem:[%s1365_s14 + $0x20] sm:$0xff]  ;;  %v422_v54 = vld [vmem:[%s1365_s14 + $0x28] sm:$0xff]  ;;  %p680_p6 = scmp.ge.s32.totalorder %s1107_s21, 1 }
 0x196   : > { %v819_v52 = vpack.c.bf16 %v420_v50, %v419_v47  ;;  %v822_v55 = vpack.c.bf16 %v422_v54, %v421_v53  ;;  %v423_v56 = vld [vmem:[%s1365_s14 + $0x30] sm:$0xff]  ;;  %v424_v57 = vld [vmem:[%s1365_s14 + $0x38] sm:$0xff]  ;;  %v425_v59 = vld [vmem:[%s1365_s14 + $0x40] sm:$0xff] }
 0x197   : > { %817 = vmatpush3.bf16.msra.mxu0 %v816_v49  ;;  %v825_v58 = vpack.c.bf16 %v424_v57, %v423_v56  ;;  %v426_v60 = vld [vmem:[%s1365_s14 + $0x48] sm:$0xff]  ;;  %v427_v62 = vld [vmem:[%s1365_s14 + $0x50] sm:$0xff]  ;;  %v428_v63 = vld [vmem:[%s1365_s14 + $0x58] sm:$0xff] }
 0x198   : > { %818 = vmatprep.subr.bf16.mxu0 %v1126_v48  ;;  %v828_v61 = vpack.c.bf16 %v426_v60, %v425_v59  ;;  %v831_v0 = vpack.c.bf16 %v428_v63, %v427_v62  ;;  %v429_v1 = vld [vmem:[%s1365_s14 + $0x60] sm:$0xff]  ;;  %v430_v2 = vld [vmem:[%s1365_s14 + $0x68] sm:$0xff]  ;;  %v431_v4 = vld [vmem:[%s1365_s14 + $0x70] sm:$0xff] }
 0x199   : > { %v834_v3 = vpack.c.bf16 %v430_v2, %v429_v1  ;;  %v432_v5 = vld [vmem:[%s1365_s14 + $0x78] sm:$0xff]  ;;  %v679_v8 = vld [vmem:[%s301_s27] ss:$0 sm:$0xff] }
 0x19a   : > { %v837_v6 = vpack.c.bf16 %v432_v5, %v431_v4  ;;  %v416_v7 = vld [vmem:[#allocation2] sm:$0xff] }
 0x19b   : > { %820 = vmatpush3.bf16.msra.mxu0 %v819_v52 }
 0x19c   : > { %821 = vmatprep.subr.bf16.mxu0 %v1126_v48 }
 0x19f   : > { %823 = vmatpush3.bf16.msra.mxu0 %v822_v55 }
 0x1a0   : > { %824 = vmatprep.subr.bf16.mxu0 %v1126_v48 }
 0x1a3   : > { %826 = vmatpush3.bf16.msra.mxu0 %v825_v58 }
 0x1a4   : > { %827 = vmatprep.subr.bf16.mxu0 %v1126_v48 }
 0x1a7   : > { %829 = vmatpush3.bf16.msra.mxu0 %v828_v61 }
 0x1a8   : > { %830 = vmatprep.subr.bf16.mxu0 %v1126_v48 }
 0x1ab   : > { %832 = vmatpush3.bf16.msra.mxu0 %v831_v0 }
 0x1ac   : > { %833 = vmatprep.subr.bf16.mxu0 %v1126_v48 }
 0x1af   : > { %835 = vmatpush3.bf16.msra.mxu0 %v834_v3 }
 0x1b0   : > { %836 = vmatprep.subr.bf16.mxu0 %v1126_v48 }
 0x1b3   : > { %838 = vmatpush3.bf16.msra.mxu0 %v837_v6 }
 0x1b6   : > { %789 = vmatmul.mubr.f32.vlgmr.msra.gmra.mrb[0].mxu0 %v416_v7 }
 0x284   : > { %513 = sbr.rel (%p680_p6) target bundleno = 690 (0x2b2), region = 60 }
 0x289   : > { %v506_v9 = vpop.f32.mrb[0].mxu0 }
 0x28a   : > { %v507_v10 = vadd.f32 %v679_v8, %v506_v9  ;;  %v790_v11 = vpop.f32.mrb[1].mxu0 }
 0x28c   : > { %v514_v12 = vmax.f32 %v507_v10, -1.0 }
 0x28e   : > { %v516_v13 = vand.u32 2147483647, %v514_v12  ;;  %v515_v23 = vmax.f32 %v514_v12, 0.0 }
 0x290   : > { %v517_v14 = vsub.f32 0.0, %v516_v13 }
 0x292   : > { %v518_v15 = vmul.f32 1.442695, %v517_v14 }
 0x294   : > { %935 = vpow2.f32 %v518_v15 }
 0x29e   : > { %v936_v16 = vpop.eup %935 }
 0x29f   : > { %v520_v17 = vadd.f32 1.0, %v936_v16  ;;  %v523_v18 = vmul.f32 -0.5, %v936_v16  ;;  %v526_v20 = vand.u32 2147483647, %v936_v16 }
 0x2a1   : > { %937 = vlog2.f32 %v520_v17  ;;  %v524_v19 = vadd.f32 1.0, %v523_v18  ;;  %vm527_vm3 = vcmp.lt.f32.partialorder %v526_v20, 0.0004427343 }
 0x2a3   : > { %v525_v21 = vmul.f32 %v936_v16, %v524_v19 }
 0x2ab   : > { %v938_v22 = vpop.eup %937 }
 0x2ac   : > { %v522_v24 = vmul.f32 0.6931472, %v938_v22 }
 0x2ae   : > { %v528_v25 = vsel %vm527_vm3, %v525_v21, %v522_v24 }
 0x2af   : > { %v529_v26 = vadd.f32 %v528_v25, %v515_v23 }
 0x2b1   : > { %530 = vst [vmem:[%s1382_s13] sm:$0xff] %v529_v26 }
 0x2b2 PF: > { %534 = sbr.rel (%p299_p7) target bundleno = 697 (0x2b9), region = 64  ;;  %v682_v27 = vclamps-f32 (!%p299_p7), %v507_v10, 3.0 }
 0x2b4   : > { %537 = vst [vmem:[%s1382_s13] sm:$0xff] (!%p299_p7), %v682_v27 }
 0x2b9 PF: > { %s684_s9 = sshll.u32 %s1107_s21, 7  ;;  %s554_s25 = sshll.u32 %s1382_s13, 4  ;;  %s555_s25 = int_to_ptr.vmem [resolvable:$true] %s554_s25 }
 0x2ba   : > { %s1418_s14 = scalar_lea.hbm %s1467_s5, %s684_s9  ;;  %s539_s24 = scalar_lea.sflag [#allocation5], %s1362_s10 }
 0x2bb   : > { %s1025_s16 = scalar_lea.vmem %s555_s25, 128  ;;  %p1493_p9 = scmp.ne.s32.totalorder %s1477_s29, 0 }
 0x2bc   : > { %p1026_p3 = scmp.ne.s32.totalorder %s555_s25, %s1025_s16  ;;  %s1129_s26 = smov [#allocation9]  }
 0x2bd   : > { %s1029_s27 = sshll.u32 %s1129_s26, 4  ;;  %s1030_s27 = int_to_ptr.vmem [resolvable:$false] %s1029_s27 }
 0x2be   : > { %p1027_p13 = pnand %p1026_p3, %p1493_p9  ;;  %s1031_s28 = scalar_lea.vmem %s1030_s27, 256 }
 0x2bf   : > { %p1032_p5 = scmp.lt.s32.totalorder %s555_s25, %s1030_s27  ;;  %p1033_p8 = scmp.lt.s32.totalorder %s1031_s28, %s1025_s16 }
 0x2c0   : > { %p1028_p4 = pneg %p1027_p13 }
 0x2c1   : > { %p1034_p12 = por %p1033_p8, %p1032_p5 }
 0x2c3   : > { %p1035_p10 = pnand %p1034_p12, %p1028_p4 }
 0x2c5   : > { %1038 = shalt.err (!%p1035_p10)
}
 0x2c6   : > { %s1039_s21 = scalar_lea.hbm %s1418_s14, 128  ;;  %s1043_s7 = scalar_lea.hbm %s1467_s5, 256 }
 0x2c7   : > { %p1040_p11 = scmp.ne.s32.totalorder %s1418_s14, %s1039_s21  ;;  %p1044_p7 = scmp.lt.u32.totalorder %s1418_s14, %s1467_s5 }
 0x2c8   : > { %p1045_p0 = scmp.lt.u32.totalorder %s1043_s7, %s1039_s21  ;;  %p1047_p3 = scmp.lt.u32.totalorder %s1039_s21, %s1418_s14 }
 0x2c9   : > { %p1041_p1 = pnand %p1040_p11, %p1493_p9 }
 0x2ca   : > { %p1046_p6 = por %p1045_p0, %p1044_p7 }
 0x2cb   : > { %p1042_p2 = pneg %p1041_p1 }
 0x2cc   : > { %p1048_p13 = por %p1047_p3, %p1046_p6 }
 0x2ce   : > { %p1049_p4 = pnand %p1048_p13, %p1042_p2 }
 0x2d0   : > { %1052 = shalt.err (!%p1049_p4)
}
 0x2d1   : > { %849 = dma.vmem_to_hbm [thread:$0]  (%p1493_p9), %s555_s25, 128, %s1418_s14, %s539_s24  }
 0x2d2 PF: > { %s566_s9 = sand.u32 1, %s1095_s18   ;;  %p1494_p5 = scmp.ne.s32.totalorder %s1478_s30, 0 }
 0x2d3   : > { %p1495_p8 = scmp.ge.s32.totalorder %s1115_s23, 2  ;;  %s567_s6 = scalar_lea.sflag [#allocation5], %s566_s9 }
 0x2d5   : > { %p863_p12 = pnand %p1495_p8, %p1494_p5 }
 0x2d7   : > { %1090 = dma.done.wait (!%p863_p12), %s567_s6, 128  }
 0x2d8   : > { %1092 = vsyncadd (!%p863_p12), %s567_s6, 4294967168  ;;  %s20_s23 = sadd.s32 1, %s1115_s23   ;;  %s1496_s18 = smov %s1099_s19 }
 0x2d9   : > { %p17_p10 = scmp.ge.s32.totalorder %s20_s23, 4   ;;  %s1497_s19 = smov %s1103_s20 }
 0x2da   : > { %s1498_s20 = smov %s1348_s15  ;;  %s1499_s21 = smov %s1111_s22 }
 0x2db   : > { %s1500_s22 = smov %s1502_s17  ;;  %19 = sbr.rel (!%p17_p10) target bundleno = 6 (0x6), region = 108 }
 0x2e2   :  { %572 = vsyncpa [#allocation4], 1 }
 0x2e3   :  { %574 = vsyncpa [#allocation4 + $0x1], 1 }
 0x2e4   :  { %575 = vsyncpa [#allocation7], 1 }
 0x2e5   :  { %576 = vsyncpa [#allocation5], 1 }
 0x2e6   :  { %578 = vsyncpa [#allocation5 + $0x1], 1 }

</bundles_post_ra>
